<compile_context>
chip_gen: v6e
topology: v6e:2x2x1
jax: 0.10.0
libtpu: 0.0.40
codegen_flags: <defaults>
</compile_context>

<pallas_src>
import jax
import jax.numpy as jnp
from jax.experimental import pallas as pl
from jax.experimental.pallas import tpu as pltpu


def _round_up(v, m):
    return (v + m - 1) // m * m


def _block_diag(w, reps):
    """block_diag([w] * reps) for a 2-D w, without scipy."""
    r, c = w.shape
    out = jnp.zeros((reps * r, reps * c), w.dtype)
    for i in range(reps):
        out = out.at[i * r:(i + 1) * r, i * c:(i + 1) * c].set(w)
    return out


def _loc_mlp_kernel(x_ref, w1_ref, b1_ref, w2_ref, b2_ref, w3_ref, b3_ref, o_ref):
    # x_ref: (tmq, 2P) f32 -- P independent rows packed along the lane dim.
    # All three layers are lane-dense MXU matmuls against block-diagonal
    # weights; bias add / ReLU stay f32 on the VPU.
    x = x_ref[...]
    h1 = jnp.dot(x, w1_ref[...], preferred_element_type=jnp.float32) + b1_ref[...]
    h1 = jnp.maximum(h1, 0.0)
    h2 = jnp.dot(h1, w2_ref[...], preferred_element_type=jnp.float32) + b2_ref[...]
    h2 = jnp.maximum(h2, 0.0)
    y = jnp.dot(h2, w3_ref[...], preferred_element_type=jnp.float32) + b3_ref[...]
    o_ref[...] = y.astype(o_ref.dtype)


def loc_mlp(x, params, *, tm=None, out_dtype=None):
    """x: (N, 2) float32. params: w1,b1,w2,b2,w3,b3 in (in, out) layout."""
    N, in_dim = x.shape
    assert in_dim == 2
    num_dim = params["w1"].shape[1]
    out_dim = params["w3"].shape[1]
    out_dtype = x.dtype if out_dtype is None else out_dtype

    # Lane-packing factor: P rows share one 128-lane vreg row downstream of
    # layer 1, making the hidden activations and the output store lane-dense.
    if num_dim <= 128 and 128 % num_dim == 0:
        pack = 128 // num_dim
    else:
        pack = 1

    # Only pad N up to a multiple of the pack factor (at most pack-1 rows; no
    # pad at all in the common case).  Ragged tiles vs. the row-group tile are
    # handled by Pallas edge-block masking, not by padding to the tile size.
    n_pad = _round_up(N, pack)
    x_in = jnp.pad(x, ((0, n_pad - N), (0, 0))) if n_pad != N else x
    n_groups = n_pad // pack
    xp = x_in.reshape(n_groups, pack * in_dim).astype(jnp.float32)  # contiguous

    # Block-diagonal weight packing (each <= 128x128, grid-invariant, f32).
    w1p = _block_diag(params["w1"].astype(jnp.float32), pack)   # (2P, P*d)
    w2p = _block_diag(params["w2"].astype(jnp.float32), pack)   # (P*d, P*d)
    w3p = _block_diag(params["w3"].astype(jnp.float32), pack)   # (P*d, P*32)
    b1p = jnp.tile(params["b1"].astype(jnp.float32), pack).reshape(1, pack * num_dim)
    b2p = jnp.tile(params["b2"].astype(jnp.float32), pack).reshape(1, pack * num_dim)
    b3p = jnp.tile(params["b3"].astype(jnp.float32), pack).reshape(1, pack * out_dim)

    # Row-group tile: cap at 8192 row-groups (32768 rows, ~16 MiB of
    # double-buffered VMEM at P=4/f32) to amortize the ~0.35us/grid-step
    # overhead against the HBM roofline; otherwise aim for >=4 grid steps so
    # both v7x TensorCores get >=2 pipelined steps each.
    if tm is None:
        tmq = min(8192, _round_up(max(pl.cdiv(n_groups, 4), 16), 16))
    else:
        tmq = max(16, _round_up(int(tm) // pack, 16))
    grid = (pl.cdiv(n_groups, tmq),)

    yp = pl.pallas_call(
        _loc_mlp_kernel,
        out_shape=jax.ShapeDtypeStruct((n_groups, pack * out_dim), out_dtype),
        grid_spec=pl.GridSpec(
            grid=grid,
            in_specs=[
                pl.BlockSpec((tmq, pack * in_dim), lambda i: (i, 0)),     # x rows
                pl.BlockSpec((pack * in_dim, pack * num_dim), lambda i: (0, 0)),
                pl.BlockSpec((1, pack * num_dim), lambda i: (0, 0)),
                pl.BlockSpec((pack * num_dim, pack * num_dim), lambda i: (0, 0)),
                pl.BlockSpec((1, pack * num_dim), lambda i: (0, 0)),
                pl.BlockSpec((pack * num_dim, pack * out_dim), lambda i: (0, 0)),
                pl.BlockSpec((1, pack * out_dim), lambda i: (0, 0)),
            ],
            out_specs=pl.BlockSpec((tmq, pack * out_dim), lambda i: (i, 0)),
        ),
        compiler_params=pltpu.CompilerParams(
            dimension_semantics=("parallel",),
            # ~16 MiB peak at the largest tile; 32 MiB fits every generation
            # (v5e scoped default is only 16 MiB, v7x physical is 64 MiB).
            vmem_limit_bytes=32 * 1024 * 1024,
        ),
    )(xp, w1p, b1p, w2p, b2p, w3p, b3p)

    y = yp.reshape(n_pad, out_dim)       # contiguous row-major reshape: free
    return y[:N] if n_pad != N else y    # tiny slice only when N % pack != 0


def init_params(key, num_dim):
    """Deterministic init matching nn.Linear(2,d), (d,d), (d,32) shapes."""
    k1, k2, k3, k4, k5, k6 = jax.random.split(key, 6)

    def uniform(k, shape, fan_in):
        bound = 1.0 / jnp.sqrt(fan_in)
        return jax.random.uniform(k, shape, jnp.float32, -bound, bound)

    return {
        "w1": uniform(k1, (2, num_dim), 2),
        "b1": uniform(k2, (num_dim,), 2),
        "w2": uniform(k3, (num_dim, num_dim), num_dim),
        "b2": uniform(k4, (num_dim,), num_dim),
        "w3": uniform(k5, (num_dim, 32), num_dim),
        "b3": uniform(k6, (32,), num_dim),
    }


def loc_mlp_ref(x, p):
    h1 = jax.nn.relu(x @ p["w1"] + p["b1"])
    h2 = jax.nn.relu(h1 @ p["w2"] + p["b2"])
    return h2 @ p["w3"] + p["b3"]


if __name__ == "__main__":
    key = jax.random.PRNGKey(0)
    kp, kx = jax.random.split(key)

    num_dim = 32           # hidden width of loc_MLP
    N = 128                # number of (lat, lon)-style 2-D location rows

    params = init_params(kp, num_dim)
    x = jax.random.normal(kx, (N, 2), jnp.float32)
    y_ref = loc_mlp_ref(x, params)

    # 1) f32 path, N divisible by the pack factor; multi-step grid.
    y = jax.block_until_ready(loc_mlp(x, params))
    assert y.shape == (N, 32)
    assert jnp.allclose(y, y_ref, atol=1e-4, rtol=1e-4), "f32 mismatch vs reference"

    # 2) Ragged row-group count (last grid block is edge-masked by Pallas,
    #    no pad / slice round-trip).
    xr = x[:100]
    yr = jax.block_until_ready(loc_mlp(xr, params))
    assert yr.shape == (100, 32)
    assert jnp.allclose(yr, loc_mlp_ref(xr, params), atol=1e-4, rtol=1e-4), \
        "ragged-N (edge-masked) mismatch vs reference"

    # 3) N not divisible by the pack factor (tiny pad + slice path).
    xo = x[:102]
    yo = jax.block_until_ready(loc_mlp(xo, params))
    assert yo.shape == (102, 32)
    assert jnp.allclose(yo, loc_mlp_ref(xo, params), atol=1e-4, rtol=1e-4), \
        "non-multiple-of-pack mismatch vs reference"

    # 4) bf16 output dtype (halves the dominant HBM store traffic); loose check.
    yb = jax.block_until_ready(loc_mlp(x, params, out_dtype=jnp.bfloat16))
    assert yb.shape == (N, 32) and yb.dtype == jnp.bfloat16
    assert float(jnp.max(jnp.abs(yb.astype(jnp.float32) - y_ref))) < 0.1, \
        "bf16-output path deviates too much from reference"

    print("KERNEL_OK")
</pallas_src>

<mosaic_0001>
module attributes {stable_mosaic.version = 11 : i64} {
  func.func @_loc_mlp_kernel(%arg0: i32, %arg1: memref<16x8xf32, #tpu.memory_space<vmem>>, %arg2: memref<8x128xf32, #tpu.memory_space<vmem>>, %arg3: memref<1x128xf32, #tpu.memory_space<vmem>>, %arg4: memref<128x128xf32, #tpu.memory_space<vmem>>, %arg5: memref<1x128xf32, #tpu.memory_space<vmem>>, %arg6: memref<128x128xf32, #tpu.memory_space<vmem>>, %arg7: memref<1x128xf32, #tpu.memory_space<vmem>>, %arg8: memref<16x128xf32, #tpu.memory_space<vmem>>) attributes {dimension_semantics = [#tpu.dimension_semantics<parallel>], iteration_bounds = array<i64: 2>, scalar_prefetch = 0 : i64, scratch_operands = 0 : i64, tpu.core_type = #tpu.core_type<tc>, window_params = [{transform_indices = @transform_0, window_bounds = array<i64: 16, 8>}, {pipeline_mode = #tpu.pipeline_mode<synchronous>, transform_indices = @transform_1, window_bounds = array<i64: 8, 128>}, {pipeline_mode = #tpu.pipeline_mode<synchronous>, transform_indices = @transform_2, window_bounds = array<i64: 1, 128>}, {pipeline_mode = #tpu.pipeline_mode<synchronous>, transform_indices = @transform_3, window_bounds = array<i64: 128, 128>}, {pipeline_mode = #tpu.pipeline_mode<synchronous>, transform_indices = @transform_4, window_bounds = array<i64: 1, 128>}, {pipeline_mode = #tpu.pipeline_mode<synchronous>, transform_indices = @transform_5, window_bounds = array<i64: 128, 128>}, {pipeline_mode = #tpu.pipeline_mode<synchronous>, transform_indices = @transform_6, window_bounds = array<i64: 1, 128>}, {transform_indices = @transform_7, window_bounds = array<i64: 16, 128>}]} {
    %c0 = arith.constant 0 : index
    %c0_0 = arith.constant 0 : index
    %0 = vector.load %arg1[%c0, %c0_0] : memref<16x8xf32, #tpu.memory_space<vmem>>, vector<16x8xf32>
    %c0_1 = arith.constant 0 : index
    %c0_2 = arith.constant 0 : index
    %1 = vector.load %arg2[%c0_1, %c0_2] : memref<8x128xf32, #tpu.memory_space<vmem>>, vector<8x128xf32>
    %cst = arith.constant dense<0.000000e+00> : vector<16x128xf32>
    %2 = tpu.matmul %0, %1, %cst {dimension_numbers = #tpu.dot_dimension_numbers<[1], [0], [0], [1], [0, 0, 1, 1], [], []>} : vector<16x8xf32>, vector<8x128xf32>, vector<16x128xf32> -> vector<16x128xf32>
    %c0_3 = arith.constant 0 : index
    %c0_4 = arith.constant 0 : index
    %3 = vector.load %arg3[%c0_3, %c0_4] : memref<1x128xf32, #tpu.memory_space<vmem>>, vector<1x128xf32>
    %4 = vector.broadcast %3 : vector<1x128xf32> to vector<16x128xf32>
    %5 = arith.addf %2, %4 : vector<16x128xf32>
    %cst_5 = arith.constant 0.000000e+00 : f32
    %6 = vector.broadcast %cst_5 : f32 to vector<16x128xf32>
    %7 = arith.maximumf %5, %6 : vector<16x128xf32>
    %c0_6 = arith.constant 0 : index
    %c0_7 = arith.constant 0 : index
    %8 = vector.load %arg4[%c0_6, %c0_7] : memref<128x128xf32, #tpu.memory_space<vmem>>, vector<128x128xf32>
    %cst_8 = arith.constant dense<0.000000e+00> : vector<16x128xf32>
    %9 = tpu.matmul %7, %8, %cst_8 {dimension_numbers = #tpu.dot_dimension_numbers<[1], [0], [0], [1], [0, 0, 1, 1], [], []>} : vector<16x128xf32>, vector<128x128xf32>, vector<16x128xf32> -> vector<16x128xf32>
    %c0_9 = arith.constant 0 : index
    %c0_10 = arith.constant 0 : index
    %10 = vector.load %arg5[%c0_9, %c0_10] : memref<1x128xf32, #tpu.memory_space<vmem>>, vector<1x128xf32>
    %11 = vector.broadcast %10 : vector<1x128xf32> to vector<16x128xf32>
    %12 = arith.addf %9, %11 : vector<16x128xf32>
    %cst_11 = arith.constant 0.000000e+00 : f32
    %13 = vector.broadcast %cst_11 : f32 to vector<16x128xf32>
    %14 = arith.maximumf %12, %13 : vector<16x128xf32>
    %c0_12 = arith.constant 0 : index
    %c0_13 = arith.constant 0 : index
    %15 = vector.load %arg6[%c0_12, %c0_13] : memref<128x128xf32, #tpu.memory_space<vmem>>, vector<128x128xf32>
    %cst_14 = arith.constant dense<0.000000e+00> : vector<16x128xf32>
    %16 = tpu.matmul %14, %15, %cst_14 {dimension_numbers = #tpu.dot_dimension_numbers<[1], [0], [0], [1], [0, 0, 1, 1], [], []>} : vector<16x128xf32>, vector<128x128xf32>, vector<16x128xf32> -> vector<16x128xf32>
    %c0_15 = arith.constant 0 : index
    %c0_16 = arith.constant 0 : index
    %17 = vector.load %arg7[%c0_15, %c0_16] : memref<1x128xf32, #tpu.memory_space<vmem>>, vector<1x128xf32>
    %18 = vector.broadcast %17 : vector<1x128xf32> to vector<16x128xf32>
    %19 = arith.addf %16, %18 : vector<16x128xf32>
    %c0_17 = arith.constant 0 : index
    %c0_18 = arith.constant 0 : index
    %20 = vector.load %arg8[%c0_17, %c0_18] : memref<16x128xf32, #tpu.memory_space<vmem>>, vector<16x128xf32>
    tpu.vector_store %arg8[%c0_17, %c0_18], %19 {strides = array<i32>} : memref<16x128xf32, #tpu.memory_space<vmem>>, vector<16x128xf32>,
    return
  }
  func.func @transform_0(%arg0: i32) -> (i32, i32) {
    %c0_i32 = arith.constant 0 : i32
    %c0_i32_0 = arith.constant 0 : i32
    return %arg0, %c0_i32 : i32, i32
  }
  func.func @transform_1(%arg0: i32) -> (i32, i32) {
    %c0_i32 = arith.constant 0 : i32
    %c0_i32_0 = arith.constant 0 : i32
    %c0_i32_1 = arith.constant 0 : i32
    return %c0_i32, %c0_i32_0 : i32, i32
  }
  func.func @transform_2(%arg0: i32) -> (i32, i32) {
    %c0_i32 = arith.constant 0 : i32
    %c0_i32_0 = arith.constant 0 : i32
    %c0_i32_1 = arith.constant 0 : i32
    return %c0_i32, %c0_i32_0 : i32, i32
  }
  func.func @transform_3(%arg0: i32) -> (i32, i32) {
    %c0_i32 = arith.constant 0 : i32
    %c0_i32_0 = arith.constant 0 : i32
    %c0_i32_1 = arith.constant 0 : i32
    return %c0_i32, %c0_i32_0 : i32, i32
  }
  func.func @transform_4(%arg0: i32) -> (i32, i32) {
    %c0_i32 = arith.constant 0 : i32
    %c0_i32_0 = arith.constant 0 : i32
    %c0_i32_1 = arith.constant 0 : i32
    return %c0_i32, %c0_i32_0 : i32, i32
  }
  func.func @transform_5(%arg0: i32) -> (i32, i32) {
    %c0_i32 = arith.constant 0 : i32
    %c0_i32_0 = arith.constant 0 : i32
    %c0_i32_1 = arith.constant 0 : i32
    return %c0_i32, %c0_i32_0 : i32, i32
  }
  func.func @transform_6(%arg0: i32) -> (i32, i32) {
    %c0_i32 = arith.constant 0 : i32
    %c0_i32_0 = arith.constant 0 : i32
    %c0_i32_1 = arith.constant 0 : i32
    return %c0_i32, %c0_i32_0 : i32, i32
  }
  func.func @transform_7(%arg0: i32) -> (i32, i32) {
    %c0_i32 = arith.constant 0 : i32
    %c0_i32_0 = arith.constant 0 : i32
    return %arg0, %c0_i32 : i32, i32
  }
}

</mosaic_0001>

<bundles_post_ra>
// kernel: tpu_custom_call.1
= control target key start
LH: loop header
LB: loop body
LE: loop exit
PB: predicated region body
PF: predicated region fallthrough
CT: control target
= control target key end

     0   :  { %12 = vsyncpa [#allocation3], 0  ;;  %s1225_s0 = inlined_call_operand.vmem [shape: f32[32,8], index: 0, kind: input, shape index: {}]   ;;  %s1226_s1 = inlined_call_operand.vmem [shape: f32[8,128], index: 1, kind: input, shape index: {}]   ;;  %s1227_s2 = inlined_call_operand.vmem [shape: f32[1,128], index: 2, kind: input, shape index: {}]   ;;  %s1228_s3 = inlined_call_operand.hbm [shape: f32[128,128], index: 3, kind: input, shape index: {}]   ;;  %s1229_s4 = inlined_call_operand.vmem [shape: f32[1,128], index: 4, kind: input, shape index: {}]   ;;  %s1230_s5 = inlined_call_operand.hbm [shape: f32[128,128], index: 5, kind: input, shape index: {}]   ;;  %s1231_s6 = inlined_call_operand.vmem [shape: f32[1,128], index: 6, kind: input, shape index: {}]   ;;  %s1232_s7 = inlined_call_operand.hbm [shape: f32[32,128], index: 7, kind: output, shape index: {}]  }
   0x1   :  { %13 = vsyncpa [#allocation6], 0 }
   0x2   :  { %14 = vsyncpa [#allocation4], 0 }
   0x3   :  { %16 = vsyncpa [#allocation4 + $0x1], 0  ;;  %s1071_s24 = smov 0   ;;  %s1073_s25 = smov 0  }
   0x4   :  { %s1075_s26 = smov 0   ;;  %s1077_s27 = smov 0  }
   0x5 LB: > { %s1092_s28 = sadd.s32 4294967295, %s1022_s27   ;;  %s702_s29 = sadd.s32 4294967294, %s1022_s27   ;;  %s1022_s27 = sphi %s1077_s27, %s1246_s27   ;;  %s1018_s26 = sphi %s1075_s26, %s1245_s26   ;;  %s1014_s25 = sphi %s1073_s25, %s1244_s25   ;;  %s1010_s24 = sphi %s1071_s24, %s1243_s24  }
   0x6   : > { %s1096_s30 = sadd.s32 1, %s1022_s27   ;;  %s181_s8 = sadd.s32 1, %s1018_s26 }
   0x7   : > { %s178_s9 = ssub.s32 %s1022_s27, %s1096_s30  ;;  %p191_p0 = scmp.ne.s32.totalorder %s1018_s26, %s1014_s25 }
   0x8   : > { %p179_p1 = scmp.eq.s32.totalorder %s178_s9, 0  ;;  %p192_p2 = scmp.eq.s32.totalorder %s1092_s28, 1 }
   0x9   : > { %p197_p3 = scmp.ne.s32.totalorder %s1014_s25, %s1010_s24  ;;  %p198_p4 = scmp.eq.s32.totalorder %s702_s29, 1 }
   0xa   : > { %s1107_s10 = scalar_select %p179_p1, %s1018_s26, %s181_s8  }
   0xb   : > { %p1109_p5 = por %p192_p2, %p191_p0  ;;  %p1113_p6 = por %p198_p4, %p197_p3 }
   0xc   : > { %p703_p7 = scmp.ge.s32.totalorder %s1022_s27, 1  ;;  %p205_p8 = scmp.lt.s32.totalorder %s1022_s27, 3 }
   0xd   : > { %s1235_s12 = scalar_select %p1113_p6, 1, 0 }
   0xe   : > { %p1233_p9 = scmp.eq.s32.totalorder %s1092_s28, 0  ;;  %p1120_p10 = pnand %p703_p7, %p205_p8 }
   0xf   : > { %s1024_s14 = smov [#allocation2]   ;;  %s1025_s17 = smov [#allocation5]  }
  0x10   : > { %s223_s15 = sshll.u32 %s1024_s14, 4  ;;  %p848_p11 = pneg %p1120_p10  ;;  %s224_s15 = int_to_ptr.vmem [resolvable:$true] %s223_s15 }
  0x11   : > { %s239_s18 = sshll.u32 %s1025_s17, 4  ;;  %s913_s19 = scalar_lea.vmem %s224_s15, 2048  ;;  %s240_s18 = int_to_ptr.vmem [resolvable:$true] %s239_s18 }
  0x12   : > { %p1128_p12 = pnand %p1233_p9, %p848_p11  ;;  %p914_p0 = scmp.ne.s32.totalorder %s224_s15, %s913_s19 }
  0x13   : > { %p921_p3 = scmp.lt.s32.totalorder %s224_s15, %s224_s15  ;;  %p922_p4 = scmp.lt.s32.totalorder %s913_s19, %s913_s19 }
  0x14   : > { %p904_p13 = pneg %p1128_p12 }
  0x15   : > { %p923_p7 = por %p922_p4, %p921_p3 }
  0x16   : > { %p916_p1 = pnand %p914_p0, %p904_p13 }
  0x18   : > { %p917_p2 = pneg %p916_p1 }
  0x1a   : > { %p924_p8 = pnand %p923_p7, %p917_p2 }
  0x1c   : > { %927 = shalt.err (!%p924_p8)
}
  0x1d   : > { %s1026_s20 = smov 128   ;;  %s1027_s21 = smov 8  }
  0x1e   : > { %851 = dma.hbm_to_vmem [thread:$0]  (!%p1128_p12), %s1228_s3, 2048, %s224_s15, [#allocation3], %s1026_s20, %s1026_s20, %s1027_s21  }
  0x1f   : > { %s939_s29 = scalar_lea.vmem %s240_s18, 2048  ;;  %p947_p9 = scmp.lt.s32.totalorder %s240_s18, %s240_s18 }
  0x20   : > { %p940_p11 = scmp.ne.s32.totalorder %s240_s18, %s939_s29  ;;  %p948_p6 = scmp.lt.s32.totalorder %s939_s29, %s939_s29 }
  0x22   : > { %p942_p0 = pnand %p940_p11, %p904_p13  ;;  %p949_p3 = por %p948_p6, %p947_p9 }
  0x24   : > { %p943_p1 = pneg %p942_p0 }
  0x26   : > { %p950_p2 = pnand %p949_p3, %p943_p1 }
  0x28   : > { %953 = shalt.err (!%p950_p2)
}
  0x29   : > { %854 = dma.hbm_to_vmem [thread:$0]  (!%p1128_p12), %s1230_s5, 2048, %s240_s18, [#allocation6], %s1026_s20, %s1026_s20, %s1027_s21  }
  0x2a   : > { %267 = sbr.rel (%p1120_p10) target bundleno = 670 (0x29e), region = 48  ;;  %p1238_p4 = scmp.eq.s32.totalorder (!%p1120_p10), %s1092_s28, 0 }
  0x2f   : > { %997 = dma.done.wait (%p1238_p4), [#allocation3], 2048   ;;  %p1239_p13 = pmov %p1238_p4 }
  0x30   : > { %p1240_p7 = pmov %p1238_p4 }
  0x31   : > { %999 = vsyncadd (%p1239_p13), [#allocation3], 4294965248 }
  0x32   : > { %1001 = dma.done.wait (%p1240_p7), [#allocation6], 2048   ;;  %p1241_p6 = pmov %p1238_p4 }
  0x33   : > { %s711_s14 = sshll.u32 %s1092_s28, 1  ;;  %vm320_vm0 = vcmask 64512   ;;  %v312_v0 = vld [vmem:[%s1226_s1] sm:$0xff]  ;;  %v419_v3 = vld [vmem:[#allocation2 + $0x78] sm:$0xff]  ;;  %v418_v4 = vld [vmem:[#allocation2 + $0x70] sm:$0xff]  ;;  %s300_s29 = sand.u32 1, %s1014_s25  }
  0x34   : > { %1003 = vsyncadd (%p1241_p6), [#allocation6], 4294965248  ;;  %p304_p9 = scmp.lt.s32.totalorder %s711_s14, 3  ;;  %763 = vmatprep.subr.mxu0 %v312_v0  ;;  %768 = vmatprep.subr.mxu1 %v419_v3  ;;  %v417_v5 = vld [vmem:[#allocation2 + $0x68] sm:$0xff]  ;;  %v416_v6 = vld [vmem:[#allocation2 + $0x60] sm:$0xff]  ;;  %s710_s8 = sshll.u32 %s300_s29, 4 }
  0x35   : > { %764 = vmatpush3.msra.mxu0 %v312_v0  ;;  %769 = vmatpush3.msra.mxu1 %v419_v3  ;;  %v415_v7 = vld [vmem:[#allocation2 + $0x58] sm:$0xff]  ;;  %v414_v8 = vld [vmem:[#allocation2 + $0x50] sm:$0xff]  ;;  %v413_v9 = vld [vmem:[#allocation2 + $0x48] sm:$0xff]  ;;  %s723_s16 = sshll.u32 %s1092_s28, 8  ;;  %s1185_s20 = scalar_lea.sflag [#allocation4], %s300_s29 }
  0x36   : > { %s1248_s14 = smov (!%p304_p9, %s711_s14), 3  ;;  %770 = vmatprep.subr.mxu1 %v418_v4  ;;  %v412_v10 = vld [vmem:[#allocation2 + $0x40] sm:$0xff]  ;;  %v411_v11 = vld [vmem:[#allocation2 + $0x38] sm:$0xff]  ;;  %v410_v12 = vld [vmem:[#allocation2 + $0x30] sm:$0xff]  ;;  %s1183_s19 = scalar_lea.hbm %s1232_s7, %s723_s16 }
  0x37   : > { %s712_s15 = sshll.u32 %s1248_s14, 3  ;;  %771 = vmatpush3.msra.mxu1 %v418_v4  ;;  %v409_v13 = vld [vmem:[#allocation2 + $0x28] sm:$0xff]  ;;  %v408_v14 = vld [vmem:[#allocation2 + $0x20] sm:$0xff]  ;;  %v407_v15 = vld [vmem:[#allocation2 + $0x18] sm:$0xff]  ;;  %s1028_s28 = smov [#allocation7]  }
  0x38   : > { %s307_s17 = scalar_lea.vmem %s1225_s0, %s712_s15  ;;  %772 = vmatprep.subr.mxu1 %v417_v5  ;;  %v406_v16 = vld [vmem:[#allocation2 + $0x10] sm:$0xff]  ;;  %v405_v17 = vld [vmem:[#allocation2 + $0x8] sm:$0xff]  ;;  %v404_v18 = vld [vmem:[#allocation2] sm:$0xff]  ;;  %s302_s15 = scalar_lea.vmem [#allocation7], %s710_s8 }
  0x39   : > { %v310_v1 = vld [vmem:[%s307_s17] sm:$0xff]  ;;  %v311_v2 = vld [vmem:[%s307_s17 + $0x8] sm:$0xff]  ;;  %773 = vmatpush3.msra.mxu1 %v417_v5  ;;  %v519_v19 = vld [vmem:[#allocation5 + $0x78] sm:$0xff]  ;;  %s618_s13 = sshll.u32 %s302_s15, 4  ;;  %s958_s22 = sshll.u32 %s1028_s28, 4  ;;  %s1178_s13 = int_to_ptr.vmem [resolvable:$true] %s618_s13  ;;  %s959_s22 = int_to_ptr.vmem [resolvable:$false] %s958_s22 }
  0x3a   : > { %765 = vmatprep.mubr.msk.f32.mxu0 %vm320_vm0, %v310_v1  ;;  %774 = vmatprep.subr.mxu1 %v416_v6  ;;  %v518_v20 = vld [vmem:[#allocation5 + $0x70] sm:$0xff]  ;;  %v517_v21 = vld [vmem:[#allocation5 + $0x68] sm:$0xff]  ;;  %v516_v22 = vld [vmem:[#allocation5 + $0x60] sm:$0xff]  ;;  %s954_s21 = scalar_lea.vmem %s1178_s13, 256  ;;  %s960_s23 = scalar_lea.vmem %s959_s22, 512 }
  0x3b   : > { %766 = vmatmul.mubr.msk.f32.vlgmr.msra.gmra.mxu0 %vm320_vm0, %v311_v2  ;;  %775 = vmatpush3.msra.mxu1 %v416_v6  ;;  %v515_v23 = vld [vmem:[#allocation5 + $0x58] sm:$0xff]  ;;  %v514_v24 = vld [vmem:[#allocation5 + $0x50] sm:$0xff]  ;;  %v513_v25 = vld [vmem:[#allocation5 + $0x48] sm:$0xff]  ;;  %p955_p10 = scmp.ne.s32.totalorder %s1178_s13, %s954_s21  ;;  %p961_p11 = scmp.lt.s32.totalorder %s1178_s13, %s959_s22 }
  0x3c   : > { %776 = vmatprep.subr.mxu1 %v415_v7  ;;  %803 = vmatprep.subr.mxu0 %v519_v19  ;;  %v512_v26 = vld [vmem:[#allocation5 + $0x40] sm:$0xff]  ;;  %v511_v27 = vld [vmem:[#allocation5 + $0x38] sm:$0xff]  ;;  %v510_v28 = vld [vmem:[#allocation5 + $0x30] sm:$0xff]  ;;  %p962_p0 = scmp.lt.s32.totalorder %s960_s23, %s954_s21 }
  0x3d   : > { %777 = vmatpush3.msra.mxu1 %v415_v7  ;;  %804 = vmatpush3.msra.mxu0 %v519_v19  ;;  %v509_v29 = vld [vmem:[#allocation5 + $0x28] sm:$0xff]  ;;  %v508_v30 = vld [vmem:[#allocation5 + $0x20] sm:$0xff]  ;;  %v507_v38 = vld [vmem:[#allocation5 + $0x18] sm:$0xff]  ;;  %p956_p12 = pnand %p955_p10, %p1109_p5 }
  0x3e   : > { %778 = vmatprep.subr.mxu1 %v414_v8  ;;  %805 = vmatprep.subr.mxu0 %v518_v20  ;;  %v713_v31 = vld [vmem:[%s1227_s2] ss:$0 sm:$0xff]  ;;  %v506_v39 = vld [vmem:[#allocation5 + $0x10] sm:$0xff]  ;;  %v505_v40 = vld [vmem:[#allocation5 + $0x8] sm:$0xff]  ;;  %p963_p1 = por %p962_p0, %p961_p11 }
  0x3f   : > { %779 = vmatpush3.msra.mxu1 %v414_v8  ;;  %806 = vmatpush3.msra.mxu0 %v518_v20  ;;  %v504_v41 = vld [vmem:[#allocation5] sm:$0xff]  ;;  %p957_p8 = pneg %p956_p12 }
  0x40   : > { %780 = vmatprep.subr.mxu1 %v413_v9  ;;  %807 = vmatprep.subr.mxu0 %v517_v21  ;;  %v716_v42 = vld [vmem:[%s1229_s4] ss:$0 sm:$0xff] }
  0x41   : > { %781 = vmatpush3.msra.mxu1 %v413_v9  ;;  %808 = vmatpush3.msra.mxu0 %v517_v21  ;;  %v717_v49 = vld [vmem:[%s1231_s6] ss:$0 sm:$0xff]  ;;  %p964_p3 = pnand %p963_p1, %p957_p8 }
  0x42   : > { %782 = vmatprep.subr.mxu1 %v412_v10  ;;  %809 = vmatprep.subr.mxu0 %v516_v22 }
  0x43   : > { %783 = vmatpush3.msra.mxu1 %v412_v10  ;;  %810 = vmatpush3.msra.mxu0 %v516_v22 }
  0x44   : > { %784 = vmatprep.subr.mxu1 %v411_v11  ;;  %811 = vmatprep.subr.mxu0 %v515_v23 }
  0x45   : > { %785 = vmatpush3.msra.mxu1 %v411_v11  ;;  %812 = vmatpush3.msra.mxu0 %v515_v23 }
  0x46   : > { %786 = vmatprep.subr.mxu1 %v410_v12  ;;  %813 = vmatprep.subr.mxu0 %v514_v24 }
  0x47   : > { %787 = vmatpush3.msra.mxu1 %v410_v12  ;;  %814 = vmatpush3.msra.mxu0 %v514_v24 }
  0x48   : > { %788 = vmatprep.subr.mxu1 %v409_v13  ;;  %815 = vmatprep.subr.mxu0 %v513_v25 }
  0x49   : > { %789 = vmatpush3.msra.mxu1 %v409_v13  ;;  %816 = vmatpush3.msra.mxu0 %v513_v25 }
  0x4a   : > { %790 = vmatprep.subr.mxu1 %v408_v14  ;;  %817 = vmatprep.subr.mxu0 %v512_v26 }
  0x4b   : > { %791 = vmatpush3.msra.mxu1 %v408_v14  ;;  %818 = vmatpush3.msra.mxu0 %v512_v26 }
  0x4c   : > { %792 = vmatprep.subr.mxu1 %v407_v15  ;;  %819 = vmatprep.subr.mxu0 %v511_v27 }
  0x4d   : > { %793 = vmatpush3.msra.mxu1 %v407_v15  ;;  %820 = vmatpush3.msra.mxu0 %v511_v27 }
  0x4e   : > { %794 = vmatprep.subr.mxu1 %v406_v16  ;;  %821 = vmatprep.subr.mxu0 %v510_v28 }
  0x4f   : > { %795 = vmatpush3.msra.mxu1 %v406_v16  ;;  %822 = vmatpush3.msra.mxu0 %v510_v28 }
  0x50   : > { %796 = vmatprep.subr.mxu1 %v405_v17  ;;  %823 = vmatprep.subr.mxu0 %v509_v29 }
  0x51   : > { %797 = vmatpush3.msra.mxu1 %v405_v17  ;;  %824 = vmatpush3.msra.mxu0 %v509_v29 }
  0x52   : > { %798 = vmatprep.subr.mxu1 %v404_v18  ;;  %825 = vmatprep.subr.mxu0 %v508_v30 }
  0x53   : > { %799 = vmatpush3.msra.mxu1 %v404_v18  ;;  %826 = vmatpush3.msra.mxu0 %v508_v30 }
  0x54   : > { %827 = vmatprep.subr.mxu0 %v507_v38 }
  0x55   : > { %828 = vmatpush3.msra.mxu0 %v507_v38 }
  0x56   : > { %829 = vmatprep.subr.mxu0 %v506_v39 }
  0x57   : > { %830 = vmatpush3.msra.mxu0 %v506_v39 }
  0x58   : > { %831 = vmatprep.subr.mxu0 %v505_v40 }
  0x59   : > { %832 = vmatpush3.msra.mxu0 %v505_v40 }
  0x5a   : > { %833 = vmatprep.subr.mxu0 %v504_v41 }
  0x5b   : > { %834 = vmatpush3.msra.mxu0 %v504_v41 }
  0xfb   : > { %v767_v32 = vpop.f32.mrf.mxu0 }
  0xfc   : > { %v399_v33 = vadd.f32 %v767_v32, %v713_v31 }
  0xfd   : > { %v393_v34 = vpop.f32.mrf.mxu0 }
  0xfe   : > { %v394_v35 = vadd.f32 %v713_v31, %v393_v34  ;;  %v403_v37 = vmax.f32 %v399_v33, 0.0 }
 0x100   : > { %v402_v36 = vmax.f32 %v394_v35, 0.0 }
 0x102   : > { %800 = vmatprep.mubr.f32.mxu1 %v402_v36 }
 0x103   : > { %801 = vmatmul.mubr.f32.vlgmr.msra.gmra.mxu1 %v403_v37 }
 0x1c3   : > { %v802_v43 = vpop.f32.mrf.mxu1 }
 0x1c4   : > { %v499_v44 = vadd.f32 %v802_v43, %v716_v42 }
 0x1c5   : > { %v493_v45 = vpop.f32.mrf.mxu1 }
 0x1c6   : > { %v494_v46 = vadd.f32 %v716_v42, %v493_v45  ;;  %v503_v48 = vmax.f32 %v499_v44, 0.0 }
 0x1c8   : > { %v502_v47 = vmax.f32 %v494_v46, 0.0 }
 0x1ca   : > { %835 = vmatprep.mubr.f32.mxu0 %v502_v47 }
 0x1cb   : > { %836 = vmatmul.mubr.f32.vlgmr.msra.gmra.mxu0 %v503_v48 }
 0x28b   : > { %v837_v50 = vpop.f32.mrf.mxu0 }
 0x28c   : > { %v599_v51 = vadd.f32 %v837_v50, %v717_v49 }
 0x28d   : > { %v593_v52 = vpop.f32.mrf.mxu0 }
 0x28e   : > { %603 = vst [vmem:[%s302_s15 + $0x8] sm:$0xff] %v599_v51  ;;  %v594_v53 = vadd.f32 %v717_v49, %v593_v52 }
 0x290   : > { %602 = vst [vmem:[%s302_s15] sm:$0xff] %v594_v53 }
 0x291   : > { %967 = shalt.err (!%p964_p3)
}
 0x292   : > { %s968_s29 = scalar_lea.hbm %s1183_s19, 256  ;;  %s972_s14 = scalar_lea.hbm %s1232_s7, 512 }
 0x293   : > { %p969_p2 = scmp.ne.s32.totalorder %s1183_s19, %s968_s29  ;;  %p973_p7 = scmp.lt.s32.totalorder %s1183_s19, %s1232_s7 }
 0x294   : > { %p974_p6 = scmp.lt.s32.totalorder %s972_s14, %s968_s29 }
 0x295   : > { %p970_p4 = pnand %p969_p2, %p1109_p5 }
 0x296   : > { %p975_p9 = por %p974_p6, %p973_p7 }
 0x297   : > { %p971_p13 = pneg %p970_p4 }
 0x299   : > { %p976_p10 = pnand %p975_p9, %p971_p13 }
 0x29b   : > { %979 = shalt.err (!%p976_p10)
}
 0x29c   : > { %s1029_s17 = smov 128   ;;  %s1030_s18 = smov 8  }
 0x29d   : > { %846 = dma.vmem_to_hbm [thread:$0]  (%p1109_p5), %s1178_s13, 256, %s1183_s19, %s1185_s20, %s1029_s17, %s1029_s17, %s1030_s18  }
 0x29e PF: > { %p863_p12 = scmp.ge.s32.totalorder %s1022_s27, 2  ;;  %s633_s21 = sand.u32 1, %s1010_s24  }
 0x29f   : > { %p1242_p8 = scmp.ne.s32.totalorder %s1235_s12, 0  ;;  %s634_s28 = scalar_lea.sflag [#allocation4], %s633_s21 }
 0x2a1   : > { %p856_p11 = pnand %p863_p12, %p1242_p8 }
 0x2a3   : > { %p857_p0 = pneg %p856_p11 }
 0x2a5   : > { %1005 = dma.done.wait (%p857_p0), %s634_s28, 256  }
 0x2a6   : > { %1007 = vsyncadd (%p857_p0), %s634_s28, 4294967040  ;;  %p19_p1 = scmp.ge.s32.totalorder %s1096_s30, 4   ;;  %s1243_s24 = smov %s1014_s25 }
 0x2a7   : > { %s1244_s25 = smov %s1018_s26  ;;  %s1245_s26 = smov %s1107_s10 }
 0x2a8   : > { %s1246_s27 = smov %s1096_s30  ;;  %21 = sbr.rel (!%p19_p1) target bundleno = 5 (0x5), region = 92 }
 0x2ad   :  { %639 = vsyncpa [#allocation3], 1 }
 0x2ae   :  { %641 = vsyncpa [#allocation3 + $0x1], 1 }
 0x2af   :  { %642 = vsyncpa [#allocation6], 1 }
 0x2b0   :  { %643 = vsyncpa [#allocation4], 1 }
 0x2b1   :  { %645 = vsyncpa [#allocation4 + $0x1], 1 }

</bundles_post_ra>
